<compile_context>
chip_gen: v7x
topology: tpu7x:2x2x1
jax: 0.10.0
libtpu: 0.0.40
codegen_flags: <defaults>
</compile_context>

<pallas_src>
import functools

import jax
import jax.numpy as jnp
from jax import lax
from jax.experimental import pallas as pl
from jax.experimental.pallas import tpu as pltpu


def _round_up(x, m):
    return ((x + m - 1) // m) * m


def _cdiv(a, b):
    return (a + b - 1) // b


def _choose_tile(B, tile_b, min_tile=8):
    """Pick a batch-tile size tb (multiple of 8 sublanes) so that B_pad stays close
    to B, and force >= 2 grid steps when possible (v7x has 2 TensorCores)."""
    n_tiles = max(_cdiv(B, tile_b), 2 if B >= 2 * min_tile else 1)
    tb = _round_up(_cdiv(B, n_tiles), min_tile)
    B_pad = _round_up(B, tb)
    return tb, B_pad


def actor_mlp_kernel(x_ref, w1_ref, b1_ref, w2_ref, b2_ref, o_ref):
    # Layer 1: f32 matmul on the MXU (full precision), f32 bias + ReLU on the VPU.
    h = jnp.dot(x_ref[...], w1_ref[...],
                preferred_element_type=jnp.float32,
                precision=lax.Precision.HIGHEST)            # (tb, H)
    h = jnp.maximum(h + b1_ref[...], 0.0)
    # Layer 2: f32 matmul + bias; output is the true (tb, E) tile -- no lane padding.
    y = jnp.dot(h, w2_ref[...],
                preferred_element_type=jnp.float32,
                precision=lax.Precision.HIGHEST) + b2_ref[...]   # (tb, E)
    o_ref[...] = y


@functools.partial(jax.jit, static_argnames=("tile_b",))
def actor_drr_forward(state, w1, b1, w2, b2, *, tile_b=2048):
    """state: [B, 3*E] f32, w1: [3*E, H], b1: [1, H], w2: [H, E], b2: [1, E]."""
    B, K = state.shape
    H = w1.shape[1]
    E = w2.shape[1]

    tb, B_pad = _choose_tile(B, tile_b)
    xs = state
    if B_pad != B:
        # Padded rows compute ReLU(b1) @ w2 + b2 and are sliced off below -- with the
        # tile chooser above the pad is at most (tb - 1) < tile_b rows.
        xs = jnp.pad(xs, ((0, B_pad - B), (0, 0)))
    grid = (B_pad // tb,)

    flops = 2 * B_pad * (K * H + H * E)
    bytes_accessed = (B_pad * K * 4        # streamed state tiles (f32)
                      + K * H * 4          # w1 (resident)
                      + H * 4              # b1
                      + H * E * 4          # w2 (resident)
                      + E * 4              # b2
                      + B_pad * E * 4)     # output (f32, unpadded)

    out = pl.pallas_call(
        actor_mlp_kernel,
        out_shape=jax.ShapeDtypeStruct((B_pad, E), jnp.float32),
        grid=grid,
        in_specs=[
            pl.BlockSpec((tb, K), lambda i: (i, 0)),    # streamed activation tiles
            pl.BlockSpec((K, H), lambda i: (0, 0)),     # resident weights / biases
            pl.BlockSpec((1, H), lambda i: (0, 0)),
            pl.BlockSpec((H, E), lambda i: (0, 0)),
            pl.BlockSpec((1, E), lambda i: (0, 0)),
        ],
        out_specs=pl.BlockSpec((tb, E), lambda i: (i, 0)),
        compiler_params=pltpu.CompilerParams(
            dimension_semantics=("parallel",),          # batch axis across both TCs on v7x
            vmem_limit_bytes=32 * 1024 * 1024,          # generous; tiles are <1 MiB each
        ),
        cost_estimate=pl.CostEstimate(
            flops=flops, transcendentals=0, bytes_accessed=bytes_accessed),
    )(xs, w1, b1, w2, b2)

    return out[:B, :]


def init_params(key, embedding_dim, hidden_dim):
    """Init mirroring Actor_DRR.initialize(): kaiming_uniform_ (a=0) on weights,
    nn.Linear default uniform(+-1/sqrt(fan_in)) on biases.
    Weights stored pre-transposed ([in, out]) for the kernel's x @ W convention."""
    k1, k2, k3, k4 = jax.random.split(key, 4)
    in1, out1 = embedding_dim * 3, hidden_dim
    in2, out2 = hidden_dim, embedding_dim

    bound1 = jnp.sqrt(6.0 / in1)  # kaiming_uniform_ (a=0): bound = sqrt(6/fan_in)
    bound2 = jnp.sqrt(6.0 / in2)
    w1 = jax.random.uniform(k1, (in1, out1), jnp.float32, -bound1, bound1)
    w2 = jax.random.uniform(k2, (in2, out2), jnp.float32, -bound2, bound2)

    bb1 = 1.0 / jnp.sqrt(jnp.float32(in1))
    bb2 = 1.0 / jnp.sqrt(jnp.float32(in2))
    b1 = jax.random.uniform(k3, (1, out1), jnp.float32, -bb1, bb1)
    b2 = jax.random.uniform(k4, (1, out2), jnp.float32, -bb2, bb2)
    return w1, b1, w2, b2


if __name__ == "__main__":
    embedding_dim = 8
    hidden_dim = 32
    batch = 2

    key = jax.random.PRNGKey(0)
    k_state, k_params = jax.random.split(key)

    state = jax.random.normal(k_state, (batch, embedding_dim * 3), jnp.float32)
    w1, b1, w2, b2 = init_params(k_params, embedding_dim, hidden_dim)

    out = actor_drr_forward(state, w1, b1, w2, b2)
    out = jax.block_until_ready(out)
    assert out.shape == (batch, embedding_dim)

    # Pure-f32 reference (same math as the PyTorch module's forward).
    ref_h = jnp.maximum(
        jnp.dot(state, w1, precision=lax.Precision.HIGHEST) + b1, 0.0)
    ref = jnp.dot(ref_h, w2, precision=lax.Precision.HIGHEST) + b2
    assert jnp.allclose(out, ref, atol=1e-4, rtol=1e-4), (
        float(jnp.max(jnp.abs(out - ref))))

    # TODO(synk): Actor_DRR.get_action depends on external state_repr / item
    # embeddings and is not part of forward(); not implemented here.

    print("KERNEL_OK")
</pallas_src>

<mosaic_0001>
module attributes {stable_mosaic.version = 11 : i64} {
  func.func @actor_mlp_kernel(%arg0: i32, %arg1: memref<8x24xf32, #tpu.memory_space<vmem>>, %arg2: memref<24x32xf32, #tpu.memory_space<vmem>>, %arg3: memref<1x32xf32, #tpu.memory_space<vmem>>, %arg4: memref<32x8xf32, #tpu.memory_space<vmem>>, %arg5: memref<1x8xf32, #tpu.memory_space<vmem>>, %arg6: memref<8x8xf32, #tpu.memory_space<vmem>>) attributes {dimension_semantics = [#tpu.dimension_semantics<parallel>], iteration_bounds = array<i64: 1>, scalar_prefetch = 0 : i64, scratch_operands = 0 : i64, tpu.core_type = #tpu.core_type<tc>, window_params = [{transform_indices = @transform_0, window_bounds = array<i64: 8, 24>}, {pipeline_mode = #tpu.pipeline_mode<synchronous>, transform_indices = @transform_1, window_bounds = array<i64: 24, 32>}, {pipeline_mode = #tpu.pipeline_mode<synchronous>, transform_indices = @transform_2, window_bounds = array<i64: 1, 32>}, {pipeline_mode = #tpu.pipeline_mode<synchronous>, transform_indices = @transform_3, window_bounds = array<i64: 32, 8>}, {pipeline_mode = #tpu.pipeline_mode<synchronous>, transform_indices = @transform_4, window_bounds = array<i64: 1, 8>}, {transform_indices = @transform_5, window_bounds = array<i64: 8, 8>}]} {
    %c0 = arith.constant 0 : index
    %c0_0 = arith.constant 0 : index
    %0 = vector.load %arg1[%c0, %c0_0] : memref<8x24xf32, #tpu.memory_space<vmem>>, vector<8x24xf32>
    %c0_1 = arith.constant 0 : index
    %c0_2 = arith.constant 0 : index
    %1 = vector.load %arg2[%c0_1, %c0_2] : memref<24x32xf32, #tpu.memory_space<vmem>>, vector<24x32xf32>
    %cst = arith.constant dense<0.000000e+00> : vector<8x32xf32>
    %2 = tpu.matmul %0, %1, %cst {dimension_numbers = #tpu.dot_dimension_numbers<[1], [0], [0], [1], [0, 0, 1, 1], [], []>, precision = #tpu.contract_precision<fp32>} : vector<8x24xf32>, vector<24x32xf32>, vector<8x32xf32> -> vector<8x32xf32>
    %c0_3 = arith.constant 0 : index
    %c0_4 = arith.constant 0 : index
    %3 = vector.load %arg3[%c0_3, %c0_4] : memref<1x32xf32, #tpu.memory_space<vmem>>, vector<1x32xf32>
    %4 = vector.broadcast %3 : vector<1x32xf32> to vector<8x32xf32>
    %5 = arith.addf %2, %4 : vector<8x32xf32>
    %cst_5 = arith.constant 0.000000e+00 : f32
    %6 = vector.broadcast %cst_5 : f32 to vector<8x32xf32>
    %7 = arith.maximumf %5, %6 : vector<8x32xf32>
    %c0_6 = arith.constant 0 : index
    %c0_7 = arith.constant 0 : index
    %8 = vector.load %arg4[%c0_6, %c0_7] : memref<32x8xf32, #tpu.memory_space<vmem>>, vector<32x8xf32>
    %cst_8 = arith.constant dense<0.000000e+00> : vector<8x8xf32>
    %9 = tpu.matmul %7, %8, %cst_8 {dimension_numbers = #tpu.dot_dimension_numbers<[1], [0], [0], [1], [0, 0, 1, 1], [], []>, precision = #tpu.contract_precision<fp32>} : vector<8x32xf32>, vector<32x8xf32>, vector<8x8xf32> -> vector<8x8xf32>
    %c0_9 = arith.constant 0 : index
    %c0_10 = arith.constant 0 : index
    %10 = vector.load %arg5[%c0_9, %c0_10] : memref<1x8xf32, #tpu.memory_space<vmem>>, vector<1x8xf32>
    %11 = vector.broadcast %10 : vector<1x8xf32> to vector<8x8xf32>
    %12 = arith.addf %9, %11 : vector<8x8xf32>
    %c0_11 = arith.constant 0 : index
    %c0_12 = arith.constant 0 : index
    %13 = vector.load %arg6[%c0_11, %c0_12] : memref<8x8xf32, #tpu.memory_space<vmem>>, vector<8x8xf32>
    tpu.vector_store %arg6[%c0_11, %c0_12], %12 {strides = array<i32>} : memref<8x8xf32, #tpu.memory_space<vmem>>, vector<8x8xf32>,
    return
  }
  func.func @transform_0(%arg0: i32) -> (i32, i32) {
    %c0_i32 = arith.constant 0 : i32
    %c0_i32_0 = arith.constant 0 : i32
    return %arg0, %c0_i32 : i32, i32
  }
  func.func @transform_1(%arg0: i32) -> (i32, i32) {
    %c0_i32 = arith.constant 0 : i32
    %c0_i32_0 = arith.constant 0 : i32
    %c0_i32_1 = arith.constant 0 : i32
    return %c0_i32, %c0_i32_0 : i32, i32
  }
  func.func @transform_2(%arg0: i32) -> (i32, i32) {
    %c0_i32 = arith.constant 0 : i32
    %c0_i32_0 = arith.constant 0 : i32
    %c0_i32_1 = arith.constant 0 : i32
    return %c0_i32, %c0_i32_0 : i32, i32
  }
  func.func @transform_3(%arg0: i32) -> (i32, i32) {
    %c0_i32 = arith.constant 0 : i32
    %c0_i32_0 = arith.constant 0 : i32
    %c0_i32_1 = arith.constant 0 : i32
    return %c0_i32, %c0_i32_0 : i32, i32
  }
  func.func @transform_4(%arg0: i32) -> (i32, i32) {
    %c0_i32 = arith.constant 0 : i32
    %c0_i32_0 = arith.constant 0 : i32
    %c0_i32_1 = arith.constant 0 : i32
    return %c0_i32, %c0_i32_0 : i32, i32
  }
  func.func @transform_5(%arg0: i32) -> (i32, i32) {
    %c0_i32 = arith.constant 0 : i32
    %c0_i32_0 = arith.constant 0 : i32
    return %arg0, %c0_i32 : i32, i32
  }
}

</mosaic_0001>

<bundles_post_ra>
// kernel: actor_drr_forward.1
= control target key start
LH: loop header
LB: loop body
LE: loop exit
PB: predicated region body
PF: predicated region fallthrough
CT: control target
= control target key end

     0   :  { %vm31_vm0 = vcmask 195584   ;;  %v1268_v0 = vmov 0.0|0.0   ;;  %vm1269_vm1 = vmmov 0   ;;  %v1270_v4 = vmov 0.0   ;;  %s1382_s1 = inlined_call_operand.vmem [shape: f32[24,32], index: 1, kind: input, shape index: {}]   ;;  %s1383_s0 = inlined_call_operand.vmem [shape: f32[8,24], index: 0, kind: input, shape index: {}]   ;;  %s1384_s3 = inlined_call_operand.vmem [shape: f32[32,8], index: 3, kind: input, shape index: {}]   ;;  %s1385_s2 = inlined_call_operand.vmem [shape: f32[1,32], index: 2, kind: input, shape index: {}]   ;;  %s1386_s4 = inlined_call_operand.vmem [shape: f32[1,8], index: 4, kind: input, shape index: {}]   ;;  %s1387_s5 = inlined_call_operand.vmem [shape: f32[8,8], index: 5, kind: output, shape index: {}]  }
   0x1   :  { %1190 = vmatprep.subr.bf16.mxu0 %v1268_v0  ;;  %v21_v1 = vld [vmem:[%s1382_s1] sm:$0xff]  ;;  %v22_v2 = vld [vmem:[%s1382_s1 + $0x8] sm:$0xff]  ;;  %v23_v3 = vld [vmem:[%s1382_s1 + $0x10] sm:$0xff]  ;;  %1076 = vmatprep.mubr.msk.f32.mxu0 %vm1269_vm1, %v1270_v4  ;;  %vm519_vm2 = vcmask 261120   ;;  %vm1008_vm3 = vcmask 64512  }
   0x2   :  { %v36_v5 = vand.u32 4294901760, %v21_v1  ;;  %v39_v6 = vand.u32 4294901760, %v22_v2  ;;  %v42_v7 = vand.u32 4294901760, %v23_v3  ;;  %v20_v8 = vld [vmem:[%s1383_s0] sm:$0xff]  ;;  %1214 = vmatprep.subr.bf16.mxu1 %v1268_v0  ;;  %1143 = vmatprep.mubr.msk.f32.mxu1 %vm1269_vm1, %v1270_v4  ;;  %v509_v32 = vld [vmem:[%s1384_s3 + $0x8] sm:$0xff]  ;;  %v510_v37 = vld [vmem:[%s1384_s3 + $0x10] sm:$0xff] }
   0x3   :  { %v33_v9 = vsel %vm31_vm0, %v20_v8, 0  ;;  %v508_v31 = vld [vmem:[%s1384_s3] sm:$0xff]  ;;  %v527_v34 = vand.u32 4294901760, %v509_v32  ;;  %v511_v38 = vld [vmem:[%s1384_s3 + $0x18] sm:$0xff]  ;;  %v530_v41 = vand.u32 4294901760, %v510_v37 }
   0x4   :  { %v1191_v10 = vpack.c.bf16 %v39_v6, %v36_v5  ;;  %v115_v11 = vsub.f32 %v21_v1, %v36_v5  ;;  %v122_v12 = vsub.f32 %v22_v2, %v39_v6  ;;  %v129_v13 = vsub.f32 %v23_v3, %v42_v7  ;;  %v1014_v63 = vld [vmem:[%s1385_s2] ss:$0 sm:$0xff] }
   0x5   :  { %v103_v14 = vand.u32 4294901760, %v33_v9  ;;  %v524_v33 = vand.u32 4294901760, %v508_v31  ;;  %v611_v36 = vsub.f32 %v509_v32, %v527_v34  ;;  %v533_v42 = vand.u32 4294901760, %v511_v38 }
   0x6   :  { %1192 = vmatpush3.bf16.msra.mxu0 %v1191_v10  ;;  %v116_v15 = vand.u32 4294901760, %v115_v11  ;;  %v123_v16 = vand.u32 4294901760, %v122_v12  ;;  %v130_v20 = vand.u32 4294901760, %v129_v13  ;;  %v1197_v29 = vpack.c.bf16 %v122_v12, %v115_v11 }
   0x7   :  { %1074 = vmatprep.subr.mxu0 %v1270_v4  ;;  %v104_v17 = vsub.f32 %v33_v9, %v103_v14  ;;  %v604_v35 = vsub.f32 %v508_v31, %v524_v33  ;;  %v612_v40 = vand.u32 4294901760, %v611_v36  ;;  %v618_v45 = vsub.f32 %v510_v37, %v530_v41 }
   0x8   :  { %v117_v18 = vsub.f32 %v115_v11, %v116_v15  ;;  %v124_v19 = vsub.f32 %v122_v12, %v123_v16  ;;  %v131_v26 = vsub.f32 %v129_v13, %v130_v20  ;;  %v1203_v30 = vpack.c.bf16 %v123_v16, %v116_v15 }
   0x9   :  { %v105_v21 = vand.u32 4294901760, %v104_v17  ;;  %v605_v39 = vand.u32 4294901760, %v604_v35  ;;  %v613_v44 = vsub.f32 %v611_v36, %v612_v40  ;;  %v625_v46 = vsub.f32 %v511_v38, %v533_v42 }
   0xa   :  { %1075 = vmatpush3.msra.mxu0 %v42_v7  ;;  %v118_v22 = vand.u32 4294901760, %v117_v18  ;;  %v125_v23 = vand.u32 4294901760, %v124_v19  ;;  %v132_v28 = vand.u32 4294901760, %v131_v26  ;;  %v619_v49 = vand.u32 4294901760, %v618_v45 }
   0xb   :  { %v106_v24 = vsub.f32 %v104_v17, %v105_v21  ;;  %1193 = vmatprep.subr.bf16.mxu0 %v1268_v0  ;;  %v606_v43 = vsub.f32 %v604_v35, %v605_v39  ;;  %v614_v48 = vand.u32 4294901760, %v613_v44  ;;  %v626_v50 = vand.u32 4294901760, %v625_v46 }
   0xc   :  { %v1194_v25 = vpack.c.bf16 %v125_v23, %v118_v22  ;;  %v620_v52 = vsub.f32 %v618_v45, %v619_v49  ;;  %v1209_v57 = vpack.c.bf16 %v527_v34, %v524_v33  ;;  %v1221_v58 = vpack.c.bf16 %v611_v36, %v604_v35 }
   0xd   :  { %v107_v27 = vand.u32 4294901760, %v106_v24  ;;  %v607_v47 = vand.u32 4294901760, %v606_v43  ;;  %v627_v53 = vsub.f32 %v625_v46, %v626_v50  ;;  %v1212_v59 = vpack.c.bf16 %v533_v42, %v530_v41 }
   0xe   :  { %v621_v54 = vand.u32 4294901760, %v620_v52  ;;  %v1224_v60 = vpack.c.bf16 %v625_v46, %v618_v45  ;;  %v1233_v61 = vpack.c.bf16 %v612_v40, %v605_v39  ;;  %v1236_v62 = vpack.c.bf16 %v626_v50, %v619_v49 }
   0xf   :  { %1077 = vmatmul.mubr.f32.vlgmr.msra.gmra.mrb[0].mxu0 %v107_v27  ;;  %v1215_v51 = vpack.c.bf16 %v614_v48, %v607_v47  ;;  %v628_v55 = vand.u32 4294901760, %v627_v53 }
  0x10   :  { %1195 = vmatpush3.bf16.msra.mxu0 %v1194_v25  ;;  %1085 = vmatprep.mubr.msk.f32.mxu0 %vm1269_vm1, %v1270_v4 }
  0x11   :  { %1083 = vmatprep.subr.mxu0 %v1270_v4  ;;  %1216 = vmatpush3.bf16.msra.mxu1 %v1215_v51  ;;  %v1218_v56 = vpack.c.bf16 %v628_v55, %v621_v54 }
  0x12   :  { %1217 = vmatprep.subr.bf16.mxu1 %v1268_v0 }
  0x14   :  { %1084 = vmatpush3.msra.mxu0 %v132_v28 }
  0x15   :  { %1196 = vmatprep.subr.bf16.mxu0 %v1268_v0  ;;  %1219 = vmatpush3.bf16.msra.mxu1 %v1218_v56 }
  0x16   :  { %1220 = vmatprep.subr.bf16.mxu1 %v1268_v0 }
  0x17   :  { %1086 = vmatmul.mubr.f32.vlgmr.msra.gmra.mrb[0].mxu0 %v103_v14 }
  0x18   :  { %1198 = vmatpush3.bf16.msra.mxu0 %v1197_v29  ;;  %1094 = vmatprep.mubr.msk.f32.mxu0 %vm1269_vm1, %v1270_v4 }
  0x19   :  { %1092 = vmatprep.subr.mxu0 %v1270_v4 }
  0x1c   :  { %1093 = vmatpush3.msra.mxu0 %v129_v13 }
  0x1d   :  { %1199 = vmatprep.subr.bf16.mxu0 %v1268_v0 }
  0x1f   :  { %1095 = vmatmul.mubr.f32.vlgmr.msra.gmra.mrb[0].mxu0 %v104_v17 }
  0x20   :  { %1201 = vmatpush3.bf16.msra.mxu0 %v1191_v10  ;;  %1103 = vmatprep.mubr.msk.f32.mxu0 %vm1269_vm1, %v1270_v4 }
  0x21   :  { %1101 = vmatprep.subr.mxu0 %v1270_v4 }
  0x24   :  { %1102 = vmatpush3.msra.mxu0 %v42_v7 }
  0x25   :  { %1202 = vmatprep.subr.bf16.mxu0 %v1268_v0 }
  0x27   :  { %1104 = vmatmul.mubr.f32.vlgmr.msra.gmra.mrb[0].mxu0 %v105_v21 }
  0x28   :  { %1204 = vmatpush3.bf16.msra.mxu0 %v1203_v30  ;;  %1112 = vmatprep.mubr.msk.f32.mxu0 %vm1269_vm1, %v1270_v4 }
  0x29   :  { %1110 = vmatprep.subr.mxu0 %v1270_v4 }
  0x2c   :  { %1111 = vmatpush3.msra.mxu0 %v130_v20 }
  0x2d   :  { %1205 = vmatprep.subr.bf16.mxu0 %v1268_v0 }
  0x2f   :  { %1113 = vmatmul.mubr.f32.vlgmr.msra.gmra.mrb[0].mxu0 %v103_v14 }
  0x30   :  { %1207 = vmatpush3.bf16.msra.mxu0 %v1191_v10  ;;  %1121 = vmatprep.mubr.msk.f32.mxu0 %vm1269_vm1, %v1270_v4 }
  0x31   :  { %1119 = vmatprep.subr.mxu0 %v1270_v4 }
  0x34   :  { %1120 = vmatpush3.msra.mxu0 %v42_v7 }
  0x35   :  { %1208 = vmatprep.subr.bf16.mxu0 %v1268_v0 }
  0x37   :  { %1122 = vmatmul.mubr.f32.vlgmr.msra.gmra.mrb[0].mxu0 %v103_v14  ;;  %v1015_v14 = vld [vmem:[%s1386_s4] ss:$0 sm:$0xff] }
  0x38   :  { %1132 = vmatprep.mubr.msk.f32.mxu0 %vm1269_vm1, %v1270_v4  ;;  %1210 = vmatpush3.bf16.msra.mxu0 %v1209_v57 }
  0x39   :  { %1211 = vmatprep.subr.bf16.mxu0 %v1268_v0 }
  0x3c   :  { %1213 = vmatpush3.bf16.msra.mxu0 %v1212_v59 }
 0x10a   :  { %v503_v1 = vpop.f32.mrb[0].mxu0 }
 0x10b   :  { %v1244_v2 = vadd.f32 %v1014_v63, %v503_v1  ;;  %v1123_v3 = vpop.f32.mrb[1].mxu0 }
 0x10d   :  { %v507_v5 = vmax.f32 %v1244_v2, 0.0 }
 0x10f   :  { %v521_v6 = vsel %vm519_vm2, %v507_v5, 0 }
 0x110   :  { %v592_v7 = vand.u32 4294901760, %v521_v6 }
 0x112   :  { %v593_v8 = vsub.f32 %v521_v6, %v592_v7  ;;  %1144 = vmatmul.mubr.f32.vlgmr.msra.gmra.mrb[0].mxu1 %v592_v7 }
 0x113   :  { %1222 = vmatpush3.bf16.msra.mxu1 %v1221_v58  ;;  %1154 = vmatprep.mubr.msk.f32.mxu1 %vm1269_vm1, %v1270_v4 }
 0x114   :  { %v594_v9 = vand.u32 4294901760, %v593_v8  ;;  %1223 = vmatprep.subr.bf16.mxu1 %v1268_v0 }
 0x116   :  { %v595_v10 = vsub.f32 %v593_v8, %v594_v9 }
 0x117   :  { %1225 = vmatpush3.bf16.msra.mxu1 %v1224_v60 }
 0x118   :  { %v596_v11 = vand.u32 4294901760, %v595_v10  ;;  %1226 = vmatprep.subr.bf16.mxu1 %v1268_v0 }
 0x11a   :  { %1133 = vmatmul.mubr.f32.vlgmr.msra.gmra.mrb[2].mxu0 %v596_v11  ;;  %1155 = vmatmul.mubr.f32.vlgmr.msra.gmra.mrb[0].mxu1 %v593_v8 }
 0x11b   :  { %1228 = vmatpush3.bf16.msra.mxu1 %v1209_v57  ;;  %1165 = vmatprep.mubr.msk.f32.mxu1 %vm1269_vm1, %v1270_v4 }
 0x11c   :  { %1229 = vmatprep.subr.bf16.mxu1 %v1268_v0 }
 0x11f   :  { %1231 = vmatpush3.bf16.msra.mxu1 %v1212_v59 }
 0x120   :  { %1232 = vmatprep.subr.bf16.mxu1 %v1268_v0 }
 0x122   :  { %1166 = vmatmul.mubr.f32.vlgmr.msra.gmra.mrb[0].mxu1 %v594_v9 }
 0x123   :  { %1234 = vmatpush3.bf16.msra.mxu1 %v1233_v61  ;;  %1176 = vmatprep.mubr.msk.f32.mxu1 %vm1269_vm1, %v1270_v4 }
 0x124   :  { %1235 = vmatprep.subr.bf16.mxu1 %v1268_v0 }
 0x127   :  { %1237 = vmatpush3.bf16.msra.mxu1 %v1236_v62 }
 0x128   :  { %1238 = vmatprep.subr.bf16.mxu1 %v1268_v0 }
 0x12a   :  { %1177 = vmatmul.mubr.f32.vlgmr.msra.gmra.mrb[0].mxu1 %v592_v7 }
 0x12b   :  { %1240 = vmatpush3.bf16.msra.mxu1 %v1209_v57  ;;  %1187 = vmatprep.mubr.msk.f32.mxu1 %vm1269_vm1, %v1270_v4 }
 0x12c   :  { %1241 = vmatprep.subr.bf16.mxu1 %v1268_v0 }
 0x12f   :  { %1243 = vmatpush3.bf16.msra.mxu1 %v1212_v59 }
 0x132   :  { %1188 = vmatmul.mubr.f32.vlgmr.msra.gmra.mrb[0].mxu1 %v592_v7 }
 0x1ed   :  { %v598_v12 = vpop.f32.mrb[2].mxu0 }
 0x1ee   :  { %v1134_v13 = vpop.f32.mrb[3].mxu0  ;;  %v599_v15 = vadd.f32 %v1015_v14, %v598_v12 }
 0x205   :  { %v1004_v16 = vpop.f32.mrb[0].mxu1 }
 0x206   :  { %v1246_v17 = vadd.f32 %v1004_v16, %v599_v15  ;;  %v1189_v18 = vpop.f32.mrb[1].mxu1 }
 0x208   :  { %1009 = vst.msk [vmem:[%s1387_s5] sm:$0xff] %vm1008_vm3, %v1246_v17 }

</bundles_post_ra>
